<compile_context>
chip_gen: v6e
topology: v6e:2x2x1
jax: 0.10.0
libtpu: 0.0.40
codegen_flags: <defaults>
</compile_context>

<pallas_src>
import functools

import jax
import jax.numpy as jnp
from jax.experimental import pallas as pl
from jax.experimental.pallas import tpu as pltpu


_LANE = 128
_TARGET_BLOCK_ELEMS = 512 * 1024          # ~2 MiB of f32 per block buffer
_VMEM_LIMIT_BYTES = 32 * 1024 * 1024      # safe on v5e/v6e/v7x for these block sizes


def _pow_int(x, p):
    """x**p for positive integer p via repeated multiplies (stays on the VPU)."""
    acc = None
    base = x
    while p > 0:
        if p & 1:
            acc = base if acc is None else acc * base
        base = base * base
        p >>= 1
    return acc


def _normalize_kernel(x_ref, o_ref, *, power, axis):
    x = x_ref[...]
    xf = x.astype(jnp.float32)

    if power == 2:
        ssq = jnp.sum(xf * xf, axis=axis, keepdims=True)
        inv = jax.lax.rsqrt(ssq)                      # 1 / norm
    else:
        if float(power) == int(power) and int(power) > 0:
            xp = _pow_int(xf, int(power))
        else:
            xp = xf ** float(power)
        s = jnp.sum(xp, axis=axis, keepdims=True)
        norm = s ** (1.0 / power)                     # only on the reduced tensor
        inv = pl.reciprocal(norm, approx=True)

    if x.dtype == jnp.bfloat16:
        # Keep the broadcast-multiply in bf16 (v6e/v7x bf16 VALU path).
        o_ref[...] = (x * inv.astype(x.dtype)).astype(o_ref.dtype)
    else:
        o_ref[...] = (xf * inv).astype(o_ref.dtype)


def _pick_spatial_tile(s, max_ts=2048):
    """Largest multiple of 128 that divides s and is <= max_ts; else full s."""
    best = None
    t = _LANE
    while t <= min(s, max_ts):
        if s % t == 0:
            best = t
        t += _LANE
    return best if best is not None else s


def _pick_batch_tile(b, per_batch_elems, target=_TARGET_BLOCK_ELEMS):
    """Largest divisor of b with tb * per_batch_elems <= target (>= 1)."""
    best = 1
    for tb in range(1, b + 1):
        if b % tb == 0 and tb * per_batch_elems <= target:
            best = tb
    return best


def _cost_estimate(x, channels):
    n = x.size
    return pl.CostEstimate(
        flops=3 * n,                                   # square, sum-add, multiply
        transcendentals=max(1, n // channels),         # one rsqrt per reduced vector
        bytes_accessed=2 * n * x.dtype.itemsize,       # read + write, HBM-bound
    )


def normalize(x, power=2):
    """Lp-normalize `x` over axis 1 (matches the PyTorch Normalize module)."""
    orig_shape = x.shape

    if x.ndim == 2:
        # Lane-dense rank-2 path: reduce over the last (lane) axis directly.
        B, C = x.shape
        tb = B
        if B * C > _TARGET_BLOCK_ELEMS:
            cand = None
            for t in range(8, B, 8):                   # tiled TB must be mult. of 8
                if B % t == 0 and t * C <= _TARGET_BLOCK_ELEMS:
                    cand = t
            if cand is not None:
                tb = cand
        grid = (B // tb,)
        out = pl.pallas_call(
            functools.partial(_normalize_kernel, power=power, axis=-1),
            out_shape=jax.ShapeDtypeStruct((B, C), x.dtype),
            grid_spec=pltpu.PrefetchScalarGridSpec(
                num_scalar_prefetch=0,
                grid=grid,
                in_specs=[pl.BlockSpec((tb, C), lambda i: (i, 0))],
                out_specs=pl.BlockSpec((tb, C), lambda i: (i, 0)),
            ),
            compiler_params=pltpu.CompilerParams(
                dimension_semantics=("parallel",),
                vmem_limit_bytes=_VMEM_LIMIT_BYTES,
            ),
            cost_estimate=_cost_estimate(x, C),
        )(x)
        return out

    if x.ndim < 3:
        raise ValueError(f"unsupported rank {x.ndim}")

    # rank >= 3: (B, C, *spatial) -> (B, C, S), reduce over C (axis 1).
    B, C = x.shape[0], x.shape[1]
    S = 1
    for d in x.shape[2:]:
        S *= d
    xr = x.reshape(B, C, S)

    ts = _pick_spatial_tile(S)
    tb = _pick_batch_tile(B, C * ts)
    grid = (B // tb, S // ts)

    out = pl.pallas_call(
        functools.partial(_normalize_kernel, power=power, axis=1),
        out_shape=jax.ShapeDtypeStruct((B, C, S), x.dtype),
        grid_spec=pltpu.PrefetchScalarGridSpec(
            num_scalar_prefetch=0,
            grid=grid,
            in_specs=[pl.BlockSpec((tb, C, ts), lambda b, s: (b, 0, s))],
            out_specs=pl.BlockSpec((tb, C, ts), lambda b, s: (b, 0, s)),
        ),
        compiler_params=pltpu.CompilerParams(
            dimension_semantics=("parallel", "parallel"),
            vmem_limit_bytes=_VMEM_LIMIT_BYTES,
        ),
        cost_estimate=_cost_estimate(x, C),
    )(xr)

    return out.reshape(orig_shape)


def _reference(x, power=2):
    norm = jnp.power(jnp.sum(jnp.power(x, power), axis=1, keepdims=True), 1.0 / power)
    return x / norm


if __name__ == "__main__":
    key = jax.random.PRNGKey(0)

    # rank-4 NCHW case (the common use in p2pchf).
    x4 = jax.random.normal(key, (2, 4, 16, 16), dtype=jnp.float32)
    y4 = normalize(x4, power=2)
    jax.block_until_ready(y4)
    assert y4.shape == x4.shape
    assert jnp.allclose(y4, _reference(x4, 2), atol=1e-5, rtol=1e-5)

    # rank-2 (B, C) case (lane-dense path).
    x2 = jax.random.normal(jax.random.PRNGKey(1), (8, 32), dtype=jnp.float32)
    y2 = normalize(x2, power=2)
    jax.block_until_ready(y2)
    assert y2.shape == x2.shape
    assert jnp.allclose(y2, _reference(x2, 2), atol=1e-5, rtol=1e-5)

    print("KERNEL_OK")
</pallas_src>

<mosaic_0001>
module attributes {stable_mosaic.version = 11 : i64} {
  func.func @_normalize_kernel(%arg0: i32, %arg1: i32, %arg2: memref<2x4x256xf32, #tpu.memory_space<vmem>>, %arg3: memref<2x4x256xf32, #tpu.memory_space<vmem>>) attributes {dimension_semantics = [#tpu.dimension_semantics<parallel>, #tpu.dimension_semantics<parallel>], iteration_bounds = array<i64: 1, 1>, scalar_prefetch = 0 : i64, scratch_operands = 0 : i64, tpu.core_type = #tpu.core_type<tc>, window_params = [{transform_indices = @transform_0, window_bounds = array<i64: 2, 4, 256>}, {transform_indices = @transform_1, window_bounds = array<i64: 2, 4, 256>}]} {
    %c0 = arith.constant 0 : index
    %c0_0 = arith.constant 0 : index
    %c0_1 = arith.constant 0 : index
    %0 = vector.load %arg2[%c0, %c0_0, %c0_1] : memref<2x4x256xf32, #tpu.memory_space<vmem>>, vector<2x4x256xf32>
    %1 = arith.mulf %0, %0 : vector<2x4x256xf32>
    %cst = arith.constant dense<0.000000e+00> : vector<2x256xf32>
    %2 = vector.multi_reduction <add>, %1, %cst [1] : vector<2x4x256xf32> to vector<2x256xf32>
    %3 = vector.shape_cast %2 : vector<2x256xf32> to vector<2x1x256xf32>
    %4 = math.rsqrt %3 : vector<2x1x256xf32>
    %5 = vector.broadcast %4 : vector<2x1x256xf32> to vector<2x4x256xf32>
    %6 = arith.mulf %0, %5 : vector<2x4x256xf32>
    %c0_2 = arith.constant 0 : index
    %c0_3 = arith.constant 0 : index
    %c0_4 = arith.constant 0 : index
    %7 = vector.load %arg3[%c0_2, %c0_3, %c0_4] : memref<2x4x256xf32, #tpu.memory_space<vmem>>, vector<2x4x256xf32>
    tpu.vector_store %arg3[%c0_2, %c0_3, %c0_4], %6 {strides = array<i32>} : memref<2x4x256xf32, #tpu.memory_space<vmem>>, vector<2x4x256xf32>,
    return
  }
  func.func @transform_0(%arg0: i32, %arg1: i32) -> (i32, i32, i32) {
    %c0_i32 = arith.constant 0 : i32
    %c0_i32_0 = arith.constant 0 : i32
    return %arg0, %c0_i32, %arg1 : i32, i32, i32
  }
  func.func @transform_1(%arg0: i32, %arg1: i32) -> (i32, i32, i32) {
    %c0_i32 = arith.constant 0 : i32
    %c0_i32_0 = arith.constant 0 : i32
    return %arg0, %c0_i32, %arg1 : i32, i32, i32
  }
}

</mosaic_0001>

<bundles_post_ra>
// kernel: tpu_custom_call.1
= control target key start
LH: loop header
LB: loop body
LE: loop exit
PB: predicated region body
PF: predicated region fallthrough
CT: control target
= control target key end

     0   :  { %6 = vsyncpa [#allocation3], 0  ;;  %s177_s0 = inlined_call_operand.hbm [shape: f32[2,4,256], index: 0, kind: input, shape index: {}]   ;;  %s178_s1 = inlined_call_operand.hbm [shape: f32[2,4,256], index: 1, kind: output, shape index: {}]  }
   0x1   :  { %7 = vsyncpa [#allocation4], 0  ;;  %s151_s6 = smov [#allocation2]  }
   0x2   :  { %s13_s7 = sshll.u32 %s151_s6, 4  ;;  %s14_s7 = int_to_ptr.vmem [resolvable:$true] %s13_s7 }
   0x3   :  { %s115_s8 = scalar_lea.vmem %s14_s7, 256  ;;  %p120_p1 = scmp.lt.s32.totalorder %s14_s7, %s14_s7 }
   0x4   :  { %p116_p0 = scmp.ne.s32.totalorder %s14_s7, %s115_s8  ;;  %p121_p2 = scmp.lt.s32.totalorder %s115_s8, %s115_s8 }
   0x6   :  { %p122_p3 = por %p121_p2, %p120_p1 }
   0x8   :  { %p123_p4 = pnand %p122_p3, %p116_p0 }
   0xa   :  { %126 = shalt.err (!%p123_p4)
}
   0xb   :  { %s152_s9 = smov 128   ;;  %s153_s10 = smov 8  }
   0xc   :  { %19 = dma.hbm_to_vmem [thread:$0]  %s177_s0, 256, %s14_s7, [#allocation3], %s152_s9, %s152_s9, %s153_s10  }
   0xd   :  { %147 = dma.done.wait [#allocation3], 256  }
   0xe   :  { %148 = vsyncadd [#allocation3], 4294967040  ;;  %v23_v0 = vld [vmem:[#allocation2] sm:$0xff]  ;;  %vm33_vm0 = vcmask 1043456   ;;  %v24_v1 = vld [vmem:[#allocation2 + $0x8] sm:$0xff]  ;;  %s154_s0 = smov [#allocation5]  }
   0xf   :  { %v25_v2 = vmul.f32 %v23_v0, %v23_v0  ;;  %v26_v3 = vmul.f32 %v24_v1, %v24_v1  ;;  %s83_s13 = sshll.u32 %s154_s0, 4  ;;  %s84_s13 = int_to_ptr.vmem [resolvable:$true] %s83_s13 }
  0x10   :  { %s127_s14 = scalar_lea.vmem %s84_s13, 256  ;;  %p132_p6 = scmp.lt.s32.totalorder %s84_s13, %s84_s13 }
  0x11   :  { %v29_v4 = vcombine.high %v25_v2, %v25_v2  ;;  %v34_v5 = vsel %vm33_vm0, %v25_v2, 0.0  ;;  %v30_v6 = vcombine.high %v26_v3, %v26_v3  ;;  %v48_v7 = vsel %vm33_vm0, %v26_v3, 0.0  ;;  %p128_p5 = scmp.ne.s32.totalorder %s84_s13, %s127_s14  ;;  %p133_p7 = scmp.lt.s32.totalorder %s127_s14, %s127_s14 }
  0x12   :  { %v35_v8 = vrot.slane %v34_v5, 4  ;;  %v49_v9 = vrot.slane %v48_v7, 4 }
  0x13   :  { %v41_v10 = vsel %vm33_vm0, %v29_v4, 0.0  ;;  %v55_v11 = vsel %vm33_vm0, %v30_v6, 0.0  ;;  %p134_p8 = por %p133_p7, %p132_p6 }
  0x14   :  { %v36_v12 = vadd.f32 %v35_v8, %v34_v5  ;;  %v42_v13 = vrot.slane %v41_v10, 4  ;;  %v50_v14 = vadd.f32 %v49_v9, %v48_v7  ;;  %v56_v15 = vrot.slane %v55_v11, 4 }
  0x15   :  { %p135_p9 = pnand %p134_p8, %p128_p5 }
  0x16   :  { %v37_v16 = vrot.slane %v36_v12, 2  ;;  %v43_v17 = vadd.f32 %v42_v13, %v41_v10  ;;  %v51_v18 = vrot.slane %v50_v14, 2  ;;  %v57_v19 = vadd.f32 %v56_v15, %v55_v11 }
  0x18   :  { %v38_v20 = vadd.f32 %v37_v16, %v36_v12  ;;  %v44_v21 = vrot.slane %v43_v17, 2  ;;  %v52_v22 = vadd.f32 %v51_v18, %v50_v14  ;;  %v58_v23 = vrot.slane %v57_v19, 2 }
  0x1a   :  { %v39_v24 = vrot.slane %v38_v20, 1  ;;  %v45_v25 = vadd.f32 %v44_v21, %v43_v17  ;;  %v53_v26 = vrot.slane %v52_v22, 1  ;;  %v59_v27 = vadd.f32 %v58_v23, %v57_v19 }
  0x1c   :  { %v40_v28 = vadd.f32 %v39_v24, %v38_v20  ;;  %v46_v29 = vrot.slane %v45_v25, 1  ;;  %v54_v30 = vadd.f32 %v53_v26, %v52_v22  ;;  %v60_v31 = vrot.slane %v59_v27, 1 }
  0x1e   :  { %v47_v32 = vadd.f32 %v46_v29, %v45_v25  ;;  %99 = vrsqrt.f32 %v40_v28  ;;  %v61_v33 = vadd.f32 %v60_v31, %v59_v27 }
  0x1f   :  { %101 = vrsqrt.f32 %v54_v30 }
  0x20   :  { %103 = vrsqrt.f32 %v47_v32 }
  0x21   :  { %105 = vrsqrt.f32 %v61_v33 }
  0x2b   :  { %v100_v34 = vpop.eup %99 }
  0x2c   :  { %v102_v35 = vpop.eup %101 }
  0x2d   :  { %v104_v36 = vpop.eup %103 }
  0x2e   :  { %v106_v37 = vpop.eup %105  ;;  %v70_v38 = vcombine.low %v100_v34, %v104_v36 }
  0x2f   :  { %v71_v39 = vcombine.low %v102_v35, %v106_v37 }
  0x30   :  { %v74_v40 = vmul.f32 %v70_v38, %v23_v0 }
  0x31   :  { %v75_v41 = vmul.f32 %v71_v39, %v24_v1 }
  0x32   :  { %76 = vst [vmem:[#allocation5] sm:$0xff] %v74_v40 }
  0x33   :  { %77 = vst [vmem:[#allocation5 + $0x8] sm:$0xff] %v75_v41 }
  0x34   :  { %138 = shalt.err (!%p135_p9)
}
  0x35   :  { %89 = dma.vmem_to_hbm [thread:$0]  %s84_s13, 256, %s178_s1, [#allocation4], %s152_s9, %s152_s9, %s153_s10  }
  0x36   :  { %149 = dma.done.wait [#allocation4], 256  }
  0x37   :  { %150 = vsyncadd [#allocation4], 4294967040 }
  0x38   :  { %93 = vsyncpa [#allocation3], 1 }
  0x39   :  { %94 = vsyncpa [#allocation4], 1 }

</bundles_post_ra>
